<compile_context>
chip_gen: v7x
topology: tpu7x:2x2x1
jax: 0.10.0
libtpu: 0.0.40
codegen_flags: <defaults>
</compile_context>

<pallas_src>
import jax
import jax.numpy as jnp
from jax.experimental import pallas as pl
from jax.experimental.pallas import tpu as pltpu


def projection_attention_kernel(enc_ref, s_ref, wh_t_ref, ws_t_ref, v_ref, b_ref,
                                attn_ref, ht_ref):
    B, S, E = enc_ref.shape
    A = wh_t_ref.shape[1]

    enc = enc_ref[...]                                   # (B, S, E) bf16
    st = s_ref[...]                                      # (B, 2H)  bf16

    # wh_att(enc): batched bf16 MXU matmul with f32 accumulation.  Broadcasting
    # the (E, A) weight to (B, E, A) keeps the dot in the standard batched form
    # and avoids any in-kernel reshape/relayout of the bf16 encoder block.
    wh_b = jnp.broadcast_to(wh_t_ref[...], (B, E, A))
    proj_h = jnp.einsum('bse,bea->bsa', enc, wh_b,
                        preferred_element_type=jnp.float32)            # (B, S, A) f32

    # ws_att(s_t) with the bias folded in once (B*A adds, not S*B*A).
    proj_s = jnp.dot(st, ws_t_ref[...],
                     preferred_element_type=jnp.float32) + b_ref[...]  # (B, A) f32

    # Elementwise math stays f32 (v5e-safe).
    feat = jnp.tanh(proj_h + proj_s[:, None, :])                       # (B, S, A) f32

    # v_att as a VPU multiply + lane reduce (no N=1 MXU column, no unit lane dim).
    e_t = jnp.sum(feat * v_ref[...][None, :, :], axis=-1)              # (B, S) f32

    # Numerically-stable softmax over the sequence axis (lane axis here);
    # the divide runs on the EUP via the approximate reciprocal.
    e_max = jnp.max(e_t, axis=-1, keepdims=True)
    p = jnp.exp(e_t - e_max)
    attn = p * pl.reciprocal(jnp.sum(p, axis=-1, keepdims=True), approx=True)

    # Weighted context: sum_s attn[b, s] * enc[b, s, :] -> (B, E), f32 accumulate.
    ht_star = jnp.sum(attn[:, :, None] * enc.astype(jnp.float32), axis=1)

    attn_ref[...] = attn.astype(attn_ref.dtype)          # lane-dense (B, S) output
    ht_ref[...] = ht_star.astype(ht_ref.dtype)


def prepare_projection_attention_params(wh_att, ws_att, v_att, b_att):
    """One-time parameter prep (hoisted out of the per-step hot path).

    PyTorch nn.Linear stores weights as (out, in); the kernel wants (in, out).
    The two MXU weights are stored in bf16 (MXU-native); v_att / b_att stay f32
    rows for the f32 VPU reduce / bias add.
    """
    A = wh_att.shape[0]
    return (jnp.asarray(wh_att, jnp.float32).T.astype(jnp.bfloat16),   # (E, A)  bf16
            jnp.asarray(ws_att, jnp.float32).T.astype(jnp.bfloat16),   # (2H, A) bf16
            jnp.asarray(v_att, jnp.float32).reshape(1, A),             # (1, A)  f32
            jnp.asarray(b_att, jnp.float32).reshape(1, A))             # (1, A)  f32


def projection_attention_steps(s_t_steps, encoder_hidden_states, params):
    """Batched over T decoder steps that share the same encoder states.

    s_t_steps:             (T, B, 2H) f32
    encoder_hidden_states: (S, B, E)  f32
    Returns: attention (T, S, B, 1), ht_star (T, B, E), state_cat (T, B, E + 2H).
    """
    wh_t, ws_t, v_row, b_row = params
    T, B, H2 = s_t_steps.shape
    S, _, E = encoder_hidden_states.shape
    A = wh_t.shape[1]

    # One-time (per batch of steps) layout/dtype prep, amortized over T steps:
    # encoder states go to (B, S, E) bf16 so the sequence sits on the lane axis.
    enc_bse = jnp.transpose(encoder_hidden_states, (1, 0, 2)).astype(jnp.bfloat16)
    s_bf16 = s_t_steps.astype(jnp.bfloat16)

    attn_bs, ht_star = pl.pallas_call(
        projection_attention_kernel,
        out_shape=(
            jax.ShapeDtypeStruct((T, B, S), jnp.float32),   # attention, lane-dense (B, S)
            jax.ShapeDtypeStruct((T, B, E), jnp.float32),   # ht_star
        ),
        grid=(T,),
        in_specs=[
            pl.BlockSpec((B, S, E), lambda t: (0, 0, 0)),   # enc: resident across steps
            pl.BlockSpec((None, B, H2), lambda t: (t, 0, 0)),  # per-step decoder state
            pl.BlockSpec((E, A), lambda t: (0, 0)),
            pl.BlockSpec((H2, A), lambda t: (0, 0)),
            pl.BlockSpec((1, A), lambda t: (0, 0)),
            pl.BlockSpec((1, A), lambda t: (0, 0)),
        ],
        out_specs=(
            pl.BlockSpec((None, B, S), lambda t: (t, 0, 0)),
            pl.BlockSpec((None, B, E), lambda t: (t, 0, 0)),
        ),
        compiler_params=pltpu.CompilerParams(
            dimension_semantics=("parallel",)),
    )(enc_bse, s_bf16, wh_t, ws_t, v_row, b_row)

    # Restore the module's layouts outside the kernel; state_cat is built here
    # from the original f32 s_t (no in-kernel pass-through / duplicate stores).
    attention = jnp.transpose(attn_bs, (0, 2, 1))[..., None]          # (T, S, B, 1)
    state_cat = jnp.concatenate([ht_star, s_t_steps], axis=-1)        # (T, B, E + 2H)
    return attention, ht_star, state_cat


def projection_attention(s_t, encoder_hidden_states, params):
    """Single decoder step, identical signature/semantics to the nn.Module forward."""
    attn, ht_star, state_cat = projection_attention_steps(
        s_t[None], encoder_hidden_states, params)
    return attn[0], ht_star[0], state_cat[0]


def _reference(s_t, enc, wh, ws, v, b):
    e_t = jnp.tanh(enc @ wh.T + (s_t @ ws.T)[None, :, :] + b[None, None, :]) @ v.T
    attn = jax.nn.softmax(e_t, axis=0)                               # (S, B, 1)
    ht_star = jnp.sum(attn * enc, axis=0)                            # (B, E)
    state_cat = jnp.concatenate([ht_star, s_t], axis=1)              # (B, E + 2H)
    return attn, ht_star, state_cat


if __name__ == "__main__":
    # hps: encoder_hidden_size=32, hidden_size=16 (so s_t has 2H=32), att_hidden_size=32
    S, B = 8, 2
    E, H, A = 32, 16, 32
    T = 4   # decoder steps fused into one pallas_call

    key = jax.random.PRNGKey(0)
    k1, k2, k3, k4, k5, k6 = jax.random.split(key, 6)

    enc = jax.random.normal(k1, (S, B, E), dtype=jnp.float32)
    s_steps = jax.random.normal(k2, (T, B, 2 * H), dtype=jnp.float32)

    # Synthetic parameters in PyTorch nn.Linear layout: (out_features, in_features)
    wh_att = jax.random.normal(k3, (A, E), dtype=jnp.float32) * 0.1
    ws_att = jax.random.normal(k4, (A, 2 * H), dtype=jnp.float32) * 0.1
    v_att = jax.random.normal(k5, (1, A), dtype=jnp.float32) * 0.1
    b_att = jax.random.normal(k6, (A,), dtype=jnp.float32) * 0.1

    params = prepare_projection_attention_params(wh_att, ws_att, v_att, b_att)

    # Batched-over-steps path (the main perf lever).
    fwd_steps = jax.jit(projection_attention_steps)
    attn_t, ht_t, cat_t = jax.block_until_ready(fwd_steps(s_steps, enc, params))

    # Single-step, module-equivalent wrapper (T = 1 special case).
    fwd_one = jax.jit(projection_attention)
    attn_1, ht_1, cat_1 = jax.block_until_ready(fwd_one(s_steps[0], enc, params))

    # Tolerances loosened for bf16 MXU operands + approx reciprocal (per review).
    tol = dict(atol=2e-2, rtol=2e-2)
    for t in range(T):
        ra, rh, rc = _reference(s_steps[t], enc, wh_att, ws_att, v_att, b_att)
        assert attn_t[t].shape == ra.shape
        assert jnp.allclose(attn_t[t], ra, **tol)
        assert jnp.allclose(ht_t[t], rh, **tol)
        assert jnp.allclose(cat_t[t], rc, **tol)

    ra, rh, rc = _reference(s_steps[0], enc, wh_att, ws_att, v_att, b_att)
    assert attn_1.shape == ra.shape
    assert jnp.allclose(attn_1, ra, **tol)
    assert jnp.allclose(ht_1, rh, **tol)
    assert jnp.allclose(cat_1, rc, **tol)

    print("KERNEL_OK")
</pallas_src>

<mosaic_0001>
module attributes {stable_mosaic.version = 11 : i64} {
  func.func @projection_attention_kernel(%arg0: i32, %arg1: memref<2x8x32xbf16, #tpu.memory_space<vmem>>, %arg2: memref<1x2x32xbf16, #tpu.memory_space<vmem>>, %arg3: memref<32x32xbf16, #tpu.memory_space<vmem>>, %arg4: memref<32x32xbf16, #tpu.memory_space<vmem>>, %arg5: memref<1x32xf32, #tpu.memory_space<vmem>>, %arg6: memref<1x32xf32, #tpu.memory_space<vmem>>, %arg7: memref<1x2x8xf32, #tpu.memory_space<vmem>>, %arg8: memref<1x2x32xf32, #tpu.memory_space<vmem>>) attributes {dimension_semantics = [#tpu.dimension_semantics<parallel>], iteration_bounds = array<i64: 4>, scalar_prefetch = 0 : i64, scratch_operands = 0 : i64, tpu.core_type = #tpu.core_type<tc>, window_params = [{pipeline_mode = #tpu.pipeline_mode<synchronous>, transform_indices = @transform_0, window_bounds = array<i64: 2, 8, 32>}, {transform_indices = @transform_1, window_bounds = array<i64: 1, 2, 32>}, {pipeline_mode = #tpu.pipeline_mode<synchronous>, transform_indices = @transform_2, window_bounds = array<i64: 32, 32>}, {pipeline_mode = #tpu.pipeline_mode<synchronous>, transform_indices = @transform_3, window_bounds = array<i64: 32, 32>}, {pipeline_mode = #tpu.pipeline_mode<synchronous>, transform_indices = @transform_4, window_bounds = array<i64: 1, 32>}, {pipeline_mode = #tpu.pipeline_mode<synchronous>, transform_indices = @transform_5, window_bounds = array<i64: 1, 32>}, {transform_indices = @transform_6, window_bounds = array<i64: 1, 2, 8>}, {transform_indices = @transform_7, window_bounds = array<i64: 1, 2, 32>}]} {
    %c0 = arith.constant 0 : index
    %c0_0 = arith.constant 0 : index
    %c0_1 = arith.constant 0 : index
    %0 = vector.load %arg1[%c0, %c0_0, %c0_1] : memref<2x8x32xbf16, #tpu.memory_space<vmem>>, vector<2x8x32xbf16>
    %c0_2 = arith.constant 0 : index
    %c0_3 = arith.constant 0 : index
    %c0_4 = arith.constant 0 : index
    %1 = vector.load %arg2[%c0_2, %c0_3, %c0_4] : memref<1x2x32xbf16, #tpu.memory_space<vmem>>, vector<1x2x32xbf16>
    %2 = vector.shape_cast %1 : vector<1x2x32xbf16> to vector<2x32xbf16>
    %c0_5 = arith.constant 0 : index
    %c0_6 = arith.constant 0 : index
    %3 = vector.load %arg3[%c0_5, %c0_6] : memref<32x32xbf16, #tpu.memory_space<vmem>>, vector<32x32xbf16>
    %4 = vector.shape_cast %3 : vector<32x32xbf16> to vector<1x32x32xbf16>
    %5 = vector.broadcast %4 : vector<1x32x32xbf16> to vector<2x32x32xbf16>
    "tpu.trace_start"() <{level = 10 : i32, message = "bse,bea->bsa"}> : () -> ()
    %cst = arith.constant dense<0.000000e+00> : vector<2x8x32xf32>
    %6 = tpu.matmul %0, %5, %cst {dimension_numbers = #tpu.dot_dimension_numbers<[2], [1], [1], [2], [0, 0, 0, 1, 1, 2], [0], [0]>} : vector<2x8x32xbf16>, vector<2x32x32xbf16>, vector<2x8x32xf32> -> vector<2x8x32xf32>
    "tpu.trace_stop"() : () -> ()
    %c0_7 = arith.constant 0 : index
    %c0_8 = arith.constant 0 : index
    %7 = vector.load %arg4[%c0_7, %c0_8] : memref<32x32xbf16, #tpu.memory_space<vmem>>, vector<32x32xbf16>
    %cst_9 = arith.constant dense<0.000000e+00> : vector<2x32xf32>
    %8 = tpu.matmul %2, %7, %cst_9 {dimension_numbers = #tpu.dot_dimension_numbers<[1], [0], [0], [1], [0, 0, 1, 1], [], []>} : vector<2x32xbf16>, vector<32x32xbf16>, vector<2x32xf32> -> vector<2x32xf32>
    %c0_10 = arith.constant 0 : index
    %c0_11 = arith.constant 0 : index
    %9 = vector.load %arg6[%c0_10, %c0_11] : memref<1x32xf32, #tpu.memory_space<vmem>>, vector<1x32xf32>
    %10 = vector.broadcast %9 : vector<1x32xf32> to vector<2x32xf32>
    %11 = arith.addf %8, %10 : vector<2x32xf32>
    %12 = vector.shape_cast %11 : vector<2x32xf32> to vector<2x1x32xf32>
    %13 = vector.broadcast %12 : vector<2x1x32xf32> to vector<2x8x32xf32>
    %14 = arith.addf %6, %13 : vector<2x8x32xf32>
    %15 = math.tanh %14 : vector<2x8x32xf32>
    %c0_12 = arith.constant 0 : index
    %c0_13 = arith.constant 0 : index
    %16 = vector.load %arg5[%c0_12, %c0_13] : memref<1x32xf32, #tpu.memory_space<vmem>>, vector<1x32xf32>
    %17 = vector.shape_cast %16 : vector<1x32xf32> to vector<1x1x32xf32>
    %18 = vector.broadcast %17 : vector<1x1x32xf32> to vector<2x8x32xf32>
    %19 = arith.mulf %15, %18 : vector<2x8x32xf32>
    %cst_14 = arith.constant dense<0.000000e+00> : vector<2x8xf32>
    %20 = vector.multi_reduction <add>, %19, %cst_14 [2] : vector<2x8x32xf32> to vector<2x8xf32>
    %cst_15 = arith.constant dense<0xFF800000> : vector<2xf32>
    %21 = vector.multi_reduction <maximumf>, %20, %cst_15 [1] : vector<2x8xf32> to vector<2xf32>
    %22 = vector.shape_cast %21 : vector<2xf32> to vector<2x1xf32>
    %23 = vector.broadcast %22 : vector<2x1xf32> to vector<2x8xf32>
    %24 = arith.subf %20, %23 : vector<2x8xf32>
    %25 = math.exp %24 : vector<2x8xf32>
    %cst_16 = arith.constant dense<0.000000e+00> : vector<2xf32>
    %26 = vector.multi_reduction <add>, %25, %cst_16 [1] : vector<2x8xf32> to vector<2xf32>
    %27 = vector.shape_cast %26 : vector<2xf32> to vector<2x1xf32>
    %28 = tpu.reciprocal %27 {approx = true} : vector<2x1xf32> -> vector<2x1xf32>
    %29 = vector.broadcast %28 : vector<2x1xf32> to vector<2x8xf32>
    %30 = arith.mulf %25, %29 : vector<2x8xf32>
    %31 = vector.shape_cast %30 : vector<2x8xf32> to vector<2x8x1xf32>
    %32 = arith.extf %0 : vector<2x8x32xbf16> to vector<2x8x32xf32>
    %33 = vector.broadcast %31 : vector<2x8x1xf32> to vector<2x8x32xf32>
    %34 = arith.mulf %33, %32 : vector<2x8x32xf32>
    %cst_17 = arith.constant dense<0.000000e+00> : vector<2x32xf32>
    %35 = vector.multi_reduction <add>, %34, %cst_17 [1] : vector<2x8x32xf32> to vector<2x32xf32>
    %c0_18 = arith.constant 0 : index
    %c0_19 = arith.constant 0 : index
    %c0_20 = arith.constant 0 : index
    %36 = vector.load %arg7[%c0_18, %c0_19, %c0_20] : memref<1x2x8xf32, #tpu.memory_space<vmem>>, vector<1x2x8xf32>
    %37 = vector.shape_cast %36 : vector<1x2x8xf32> to vector<2x8xf32>
    %38 = vector.shape_cast %30 : vector<2x8xf32> to vector<1x2x8xf32>
    tpu.vector_store %arg7[%c0_18, %c0_19, %c0_20], %38 {strides = array<i32>} : memref<1x2x8xf32, #tpu.memory_space<vmem>>, vector<1x2x8xf32>,
    %c0_21 = arith.constant 0 : index
    %c0_22 = arith.constant 0 : index
    %c0_23 = arith.constant 0 : index
    %39 = vector.load %arg8[%c0_21, %c0_22, %c0_23] : memref<1x2x32xf32, #tpu.memory_space<vmem>>, vector<1x2x32xf32>
    %40 = vector.shape_cast %39 : vector<1x2x32xf32> to vector<2x32xf32>
    %41 = vector.shape_cast %35 : vector<2x32xf32> to vector<1x2x32xf32>
    tpu.vector_store %arg8[%c0_21, %c0_22, %c0_23], %41 {strides = array<i32>} : memref<1x2x32xf32, #tpu.memory_space<vmem>>, vector<1x2x32xf32>,
    return
  }
  func.func @transform_0(%arg0: i32) -> (i32, i32, i32) {
    %c0_i32 = arith.constant 0 : i32
    %c0_i32_0 = arith.constant 0 : i32
    %c0_i32_1 = arith.constant 0 : i32
    %c0_i32_2 = arith.constant 0 : i32
    return %c0_i32, %c0_i32_0, %c0_i32_1 : i32, i32, i32
  }
  func.func @transform_1(%arg0: i32) -> (i32, i32, i32) {
    %c0_i32 = arith.constant 0 : i32
    %c0_i32_0 = arith.constant 0 : i32
    %c0_i32_1 = arith.constant 0 : i32
    return %arg0, %c0_i32, %c0_i32_0 : i32, i32, i32
  }
  func.func @transform_2(%arg0: i32) -> (i32, i32) {
    %c0_i32 = arith.constant 0 : i32
    %c0_i32_0 = arith.constant 0 : i32
    %c0_i32_1 = arith.constant 0 : i32
    return %c0_i32, %c0_i32_0 : i32, i32
  }
  func.func @transform_3(%arg0: i32) -> (i32, i32) {
    %c0_i32 = arith.constant 0 : i32
    %c0_i32_0 = arith.constant 0 : i32
    %c0_i32_1 = arith.constant 0 : i32
    return %c0_i32, %c0_i32_0 : i32, i32
  }
  func.func @transform_4(%arg0: i32) -> (i32, i32) {
    %c0_i32 = arith.constant 0 : i32
    %c0_i32_0 = arith.constant 0 : i32
    %c0_i32_1 = arith.constant 0 : i32
    return %c0_i32, %c0_i32_0 : i32, i32
  }
  func.func @transform_5(%arg0: i32) -> (i32, i32) {
    %c0_i32 = arith.constant 0 : i32
    %c0_i32_0 = arith.constant 0 : i32
    %c0_i32_1 = arith.constant 0 : i32
    return %c0_i32, %c0_i32_0 : i32, i32
  }
  func.func @transform_6(%arg0: i32) -> (i32, i32, i32) {
    %c0_i32 = arith.constant 0 : i32
    %c0_i32_0 = arith.constant 0 : i32
    %c0_i32_1 = arith.constant 0 : i32
    return %arg0, %c0_i32, %c0_i32_0 : i32, i32, i32
  }
  func.func @transform_7(%arg0: i32) -> (i32, i32, i32) {
    %c0_i32 = arith.constant 0 : i32
    %c0_i32_0 = arith.constant 0 : i32
    %c0_i32_1 = arith.constant 0 : i32
    return %arg0, %c0_i32, %c0_i32_0 : i32, i32, i32
  }
}

</mosaic_0001>

<bundles_post_ra>
// kernel: projection_attention_steps.1
= control target key start
LH: loop header
LB: loop body
LE: loop exit
PB: predicated region body
PF: predicated region fallthrough
CT: control target
= control target key end

     0   :  { %13 = vsyncpa [#allocation3], 0  ;;  %s1118_s0 = inlined_call_operand.vmem [shape: bf16[2,8,32], index: 0, kind: input, shape index: {}]   ;;  %s1119_s1 = inlined_call_operand.vmem [shape: bf16[4,2,32], index: 1, kind: input, shape index: {}]   ;;  %s1120_s2 = inlined_call_operand.vmem [shape: bf16[32,32], index: 2, kind: input, shape index: {}]   ;;  %s1121_s3 = inlined_call_operand.vmem [shape: bf16[32,32], index: 3, kind: input, shape index: {}]   ;;  %s1122_s4 = inlined_call_operand.vmem [shape: f32[1,32], index: 4, kind: input, shape index: {}]   ;;  %s1123_s5 = inlined_call_operand.vmem [shape: f32[1,32], index: 5, kind: input, shape index: {}]   ;;  %s1124_s6 = inlined_call_operand.hbm [shape: f32[4,2,8], index: 6, kind: output, shape index: {0}]   ;;  %s1125_s7 = inlined_call_operand.vmem [shape: f32[4,2,32], index: 7, kind: output, shape index: {1}]  }
   0x1   :  { %15 = vsyncpa [#allocation3 + $0x1], 0  ;;  %s942_s24 = smov 0   ;;  %s944_s25 = smov 0  }
   0x2   :  { %s946_s26 = smov 0   ;;  %s948_s27 = smov 0  }
   0x3 LB: > { %s963_s28 = sadd.s32 4294967295, %s895_s27   ;;  %s722_s29 = sadd.s32 4294967294, %s895_s27   ;;  %s895_s27 = sphi %s948_s27, %s1131_s27   ;;  %s891_s26 = sphi %s946_s26, %s1130_s26   ;;  %s887_s25 = sphi %s944_s25, %s1129_s25   ;;  %s883_s24 = sphi %s942_s24, %s1128_s24  }
   0x4   : > { %s967_s30 = sadd.s32 1, %s895_s27   ;;  %s159_s8 = sadd.s32 1, %s891_s26 }
   0x5   : > { %s156_s9 = ssub.s32 %s895_s27, %s967_s30  ;;  %p169_p0 = scmp.ne.s32.totalorder %s891_s26, %s887_s25 }
   0x6   : > { %p157_p1 = scmp.eq.s32.totalorder %s156_s9, 0  ;;  %p170_p2 = scmp.eq.s32.totalorder %s963_s28, 3 }
   0x7   : > { %p175_p3 = scmp.ne.s32.totalorder %s887_s25, %s883_s24  ;;  %p176_p4 = scmp.eq.s32.totalorder %s722_s29, 3 }
   0x8   : > { %s978_s10 = scalar_select %p157_p1, %s891_s26, %s159_s8  }
   0x9   : > { %p980_p5 = por %p170_p2, %p169_p0  ;;  %p984_p6 = por %p176_p4, %p175_p3 }
   0xa   : > { %p725_p7 = scmp.ge.s32.totalorder %s895_s27, 1  ;;  %p241_p8 = scmp.lt.s32.totalorder %s895_s27, 5 }
   0xc   : > { %p242_p9 = pnand %p725_p7, %p241_p8 }
   0xd   : > { %v819_v0 = vld [vmem:[%s1121_s3] sm:$0xff] (!%p242_p9)   ;;  %v897_v1 = vmov (!%p242_p9), 0.0   ;;  %v820_v2 = vld [vmem:[%s1121_s3 + $0x8] sm:$0xff] (!%p242_p9)   ;;  %vm898_vm0 = vmmov (!%p242_p9), 0   ;;  %p275_p10 = scmp.lt.s32.totalorder (!%p242_p9), %s963_s28, 3  ;;  %vm313_vm1 = vcmask (!%p242_p9), 261120   ;;  %v361_v10 = vlaneseq (!%p242_p9) }
   0xe   : > { %245 = sbr.rel (%p242_p9) target bundleno = 1020 (0x3fc), region = 44  ;;  %750 = vmatprep.subr.bf16.mxu0 (!%p242_p9), %v897_v1  ;;  %758 = vmatprep.subr.bf16.mxu1 (!%p242_p9), %v897_v1  ;;  %v821_v3 = vld [vmem:[%s1120_s2] sm:$0xff] (!%p242_p9)   ;;  %v822_v4 = vld [vmem:[%s1120_s2 + $0x8] sm:$0xff] (!%p242_p9)   ;;  %v899_v8 = vmov (!%p242_p9), 1966171168   ;;  %vm517_vm2 = vcmask (!%p242_p9), 1041409  }
   0xf   : > { %751 = vmatpush3.bf16.msra.mxu0 (!%p242_p9), %v819_v0  ;;  %754 = vmatprep.mubr.msk.bf16.mxu0 (!%p242_p9), %vm898_vm0, %v897_v1  ;;  %v1015_v6 = vld [vmem:[%s1118_s0] sm:$0xf] (!%p242_p9)  ;;  %v1024_v7 = vld [vmem:[%s1118_s0 + $0x4] sm:$0xf] (!%p242_p9)  ;;  %v359_v9 = vunpack.c.l.s4 (!%p242_p9), %v899_v8  ;;  %v1028_v12 = vshrl.u32 (!%p242_p9), %v361_v10, 7  ;;  %v508_v44 = vand.u32 (!%p242_p9), 127, %v361_v10 }
  0x10   : > { %752 = vmatprep.subr.bf16.mxu0 (!%p242_p9), %v897_v1  ;;  %762 = vmatprep.mubr.msk.bf16.mxu1 (!%p242_p9), %vm898_vm0, %v897_v1  ;;  %v728_v13 = vld [vmem:[%s1123_s5] ss:$0 sm:$0xff] (!%p242_p9)  ;;  %vm520_vm3 = vcmask (!%p242_p9), 58368   ;;  %v900_v52 = vmov (!%p242_p9), 0   ;;  %s266_s20 = sand.u32 (!%p242_p9), 1, %s887_s25   ;;  %s738_s22 = sshll.u32 (!%p242_p9), %s963_s28, 5 }
  0x11   : > { %759 = vmatpush3.bf16.msra.mxu1 (!%p242_p9), %v821_v3  ;;  %v360_v11 = vunpack.c.0.s8 (!%p242_p9), %v359_v9  ;;  %v1035_v22 = vsub.s32 (!%p242_p9), 0, %v1028_v12  ;;  %v736_v37 = vld [vmem:[%s1122_s4] ss:$0 sm:$0xff] (!%p242_p9)  ;;  %v1045_v46 = vsub.s32 (!%p242_p9), %v508_v44, %v1028_v12  ;;  %818 = vset.pattern.permute.xlu0 (!%p242_p9), %v900_v52  ;;  %v531_v53 = vsub.s32 (!%p242_p9), 1, %v1028_v12  ;;  %s726_s21 = sshll.u32 (!%p242_p9), %s266_s20, 1  ;;  %s1068_s13 = scalar_lea.hbm (!%p242_p9), %s1124_s6, %s738_s22 }
  0x12   : > { %760 = vmatprep.subr.bf16.mxu1 (!%p242_p9), %v897_v1  ;;  %817 = vset.pattern.permute.xlu1 (!%p242_p9), %v900_v52  ;;  %s268_s23 = scalar_lea.vmem (!%p242_p9), [#allocation2], %s726_s21  ;;  %s901_s15 = smov (!%p242_p9), [#allocation2]  }
  0x13   : > { %753 = vmatpush3.bf16.msra.mxu0 (!%p242_p9), %v820_v2  ;;  %v363_v14 = vsub.s32 (!%p242_p9), %v360_v11, %v1028_v12  ;;  %s837_s16 = sshll.u32 (!%p242_p9), %s901_s15, 4  ;;  %s838_s16 = int_to_ptr.vmem [resolvable:$false] %s837_s16 }
  0x14   : > { %766 = vmatprep.subr.bf16.mxu0 (!%p242_p9), %v897_v1  ;;  %s839_s17 = scalar_lea.vmem (!%p242_p9), %s838_s16, 64 }
  0x15   : > { %s1003_s19 = scalar_select %p275_p10, %s963_s28, 3  ;;  %761 = vmatpush3.bf16.msra.mxu1 %v822_v4 }
  0x16   : > { %s622_s28 = scalar_lea.sflag [#allocation3], %s266_s20 }
  0x17   : > { %s277_s29 = scalar_lea.vmem %s1119_s1, %s1003_s19 }
  0x18   : > { %v285_v5 = vld [vmem:[%s277_s29] sm:$0x1]  ;;  %763 = vmatmul.mubr.msk.bf16.vlgmr.msra.gmra.mrb[0].mxu1 %vm313_vm1, %v1015_v6  ;;  %s639_s29 = sshll.u32 %s268_s23, 4  ;;  %s1070_s29 = int_to_ptr.vmem [resolvable:$true] %s639_s29 }
  0x19   : > { %755 = vmatmul.mubr.msk.bf16.vlgmr.msra.gmra.mrb[0].mxu0 %vm313_vm1, %v285_v5  ;;  %s833_s14 = scalar_lea.vmem %s1070_s29, 32  ;;  %p840_p0 = scmp.lt.s32.totalorder %s1070_s29, %s838_s16 }
  0x1a   : > { %767 = vmatpush3.bf16.msra.mxu0 %v821_v3  ;;  %770 = vmatprep.mubr.msk.bf16.mxu0 %vm898_vm0, %v897_v1  ;;  %p834_p11 = scmp.ne.s32.totalorder %s1070_s29, %s833_s14  ;;  %p841_p1 = scmp.lt.s32.totalorder %s839_s17, %s833_s14 }
  0x1b   : > { %768 = vmatprep.subr.bf16.mxu0 %v897_v1 }
  0x1c   : > { %p835_p12 = pnand %p834_p11, %p980_p5  ;;  %p842_p2 = por %p841_p1, %p840_p0 }
  0x1e   : > { %769 = vmatpush3.bf16.msra.mxu0 %v822_v4  ;;  %p836_p13 = pneg %p835_p12 }
  0x20   : > { %p843_p3 = pnand %p842_p2, %p836_p13 }
  0x21   : > { %771 = vmatmul.mubr.msk.bf16.vlgmr.msra.gmra.mrb[4].mxu0 %vm313_vm1, %v1024_v7 }
  0xeb   : > { %v439_v19 = vpop.f32.mrb[0].mxu1 }
  0xec   : > { %v351_v15 = vpop.f32.mrb[0].mxu0  ;;  %v764_v23 = vpop.f32.mrb[1].mxu1 }
  0xed   : > { %v352_v16 = vadd.f32 %v728_v13, %v351_v15  ;;  %v756_v17 = vpop.f32.mrb[1].mxu0  ;;  %v442_v24 = vpop.f32.mrb[2].mxu1  ;;  %v576_v13 = vunpack.c.l.bf16 %v1015_v6 }
  0xee   : > { %v354_v18 = vpop.f32.mrb[2].mxu0  ;;  %v765_v27 = vpop.f32.mrb[3].mxu1 }
  0xef   : > { %v364_v20 = vrot.slane %v352_v16, %v363_v14  ;;  %v757_v21 = vpop.f32.mrb[3].mxu0  ;;  %v577_v16 = vunpack.c.l.bf16 %v1024_v7 }
  0xf1   : > { %v365_v25 = vcombine.high %v364_v20, %v364_v20  ;;  %v372_v26 = vrot.slane %v364_v20, %v363_v14 }
  0xf3   : > { %v383_v28 = vrot.slane %v372_v26, %v1035_v22  ;;  %v379_v29 = vrot.slane %v365_v25, %v363_v14 }
  0xf4   : > { %v482_v30 = vpop.f32.mrb[4].mxu0 }
  0xf5   : > { %v440_v31 = vadd.f32 %v439_v19, %v383_v28  ;;  %v387_v32 = vrot.slane %v379_v29, %v1035_v22  ;;  %v772_v33 = vpop.f32.mrb[5].mxu0 }
  0xf6   : > { %v485_v34 = vpop.f32.mrb[6].mxu0 }
  0xf7   : > { %823 = vtanh.f32 %v440_v31  ;;  %v483_v35 = vadd.f32 %v482_v30, %v387_v32  ;;  %v773_v36 = vpop.f32.mrb[7].mxu0 }
  0xf9   : > { %825 = vtanh.f32 %v483_v35 }
 0x101   : > { %v824_v38 = vpop.eup %823 }
 0x102   : > { %v497_v39 = vmul.f32 %v824_v38, %v736_v37 }
 0x103   : > { %v826_v40 = vpop.eup %825 }
 0x104   : > { %v499_v41 = vsel %vm313_vm1, %v497_v39, 0.0  ;;  %v498_v42 = vmul.f32 %v826_v40, %v736_v37 }
 0x105   : > { %500 = vadd.xlane.f32.xlu0 %v499_v41 }
 0x106   : > { %v502_v43 = vsel %vm313_vm1, %v498_v42, 0.0 }
 0x109   : > { %503 = vadd.xlane.f32.xlu0 %v502_v43 }
 0x192   : > { %v501_v45 = vpop.xlane.xlu0 %500 }
 0x193   : > { %v512_v48 = vrot.slane %v501_v45, %v1045_v46 }
 0x196   : > { %v504_v47 = vpop.xlane.xlu0 %503 }
 0x197   : > { %v516_v49 = vrot.slane %v504_v47, %v1045_v46 }
 0x199   : > { %v518_v50 = vsel %vm517_vm2, %v516_v49, %v512_v48 }
 0x19a   : > { %v521_v51 = vsel %vm520_vm3, %v518_v50, -inf }
 0x19b   : > { %522 = vmax.xlane.f32.xlu1 %v521_v51 }
 0x228   : > { %v523_v54 = vpop.xlane.xlu1 %522 }
 0x229   : > { %v528_v55 = vrot.slane %v523_v54, %v1035_v22  ;;  %v532_v56 = vrot.slane %v523_v54, %v531_v53 }
 0x22b   : > { %v535_v57 = vsub.f32 %v501_v45, %v528_v55  ;;  %v536_v58 = vsub.f32 %v504_v47, %v532_v56 }
 0x22d   : > { %v537_v59 = vmul.f32 1.442695, %v535_v57  ;;  %v539_v60 = vmul.f32 1.442695, %v536_v58 }
 0x22f   : > { %827 = vpow2.f32 %v537_v59 }
 0x230   : > { %829 = vpow2.f32 %v539_v60 }
 0x239   : > { %v828_v61 = vpop.eup %827 }
 0x23a   : > { %v830_v62 = vpop.eup %829  ;;  %544 = vperm.xlu1 %817, %v828_v61  }
 0x23b   : > { %547 = vperm.xlu0 %818, %v830_v62  }
 0x2b9   : > { %v545_v63 = vpop.permute.xlu1 %544 }
 0x2ba   : > { %v548_v0 = vpop.permute.xlu0 %547  ;;  %v552_v1 = vrot.slane %v545_v63, %v1045_v46 }
 0x2bb   : > { %v556_v2 = vrot.slane %v548_v0, %v1045_v46 }
 0x2bd   : > { %v557_v3 = vsel %vm517_vm2, %v556_v2, %v552_v1 }
 0x2be   : > { %v559_v4 = vsel %vm520_vm3, %v557_v3, 0.0 }
 0x2bf   : > { %560 = vadd.xlane.f32.xlu1 %v559_v4 }
 0x34c   : > { %v561_v5 = vpop.xlane.xlu1 %560 }
 0x34d   : > { %831 = vrcp.f32 %v561_v5 }
 0x357   : > { %v832_v8 = vpop.eup %831 }
 0x358   : > { %v567_v9 = vrot.slane %v832_v8, %v1035_v22  ;;  %v571_v11 = vrot.slane %v832_v8, %v531_v53 }
 0x35a   : > { %v574_v10 = vmul.f32 %v828_v61, %v567_v9  ;;  %v575_v12 = vmul.f32 %v830_v62, %v571_v11 }
 0x35c   : > { %580 = vperm.xlu0 %818, %v574_v10  }
 0x360   : > { %585 = vperm.xlu0 %818, %v575_v12  }
 0x3db   : > { %v581_v14 = vpop.permute.xlu0 %580 }
 0x3dc   : > { %v588_v15 = vmul.f32 %v581_v14, %v576_v13  ;;  %v607_v20 = vrot.slane %v581_v14, %v1045_v46 }
 0x3de   : > { %v590_v17 = vsel %vm313_vm1, %v588_v15, 0.0 }
 0x3df   : > { %v591_v18 = vrot.slane %v590_v17, 4  ;;  %v586_v19 = vpop.permute.xlu0 %585 }
 0x3e0   : > { %v589_v21 = vmul.f32 %v586_v19, %v577_v16  ;;  %v611_v22 = vrot.slane %v586_v19, %v1045_v46 }
 0x3e1   : > { %v592_v23 = vadd.f32 %v591_v18, %v590_v17 }
 0x3e2   : > { %v597_v6 = vsel %vm313_vm1, %v589_v21, 0.0  ;;  %v612_v7 = vsel %vm517_vm2, %v611_v22, %v607_v20 }
 0x3e3   : > { %v593_v24 = vrot.slane %v592_v23, 2  ;;  %v598_v25 = vrot.slane %v597_v6, 4  ;;  %614 = vst.msk [vmem:[%s268_s23] sm:$0x3] %vm520_vm3, %v612_v7 }
 0x3e4   : > { %846 = shalt.err (!%p843_p3)
}
 0x3e5   : > { %s847_s18 = scalar_lea.hbm %s1068_s13, 32  ;;  %s851_s22 = scalar_lea.hbm %s1124_s6, 128 }
 0x3e6   : > { %p848_p4 = scmp.ne.s32.totalorder %s1068_s13, %s847_s18  ;;  %p852_p9 = scmp.lt.u32.totalorder %s1068_s13, %s1124_s6 }
 0x3e7   : > { %p853_p10 = scmp.lt.u32.totalorder %s851_s22, %s847_s18  ;;  %p855_p12 = scmp.lt.u32.totalorder %s847_s18, %s1068_s13 }
 0x3e8   : > { %p849_p7 = pnand %p848_p4, %p980_p5 }
 0x3e9   : > { %p854_p11 = por %p853_p10, %p852_p9 }
 0x3ea   : > { %p850_p8 = pneg %p849_p7 }
 0x3eb   : > { %p856_p13 = por %p855_p12, %p854_p11 }
 0x3ed   : > { %p857_p0 = pnand %p856_p13, %p850_p8 }
 0x3ef   : > { %860 = shalt.err (!%p857_p0)
}
 0x3f0   : > { %774 = dma.vmem_to_hbm [thread:$0]  (%p980_p5), %s1070_s29, 32, %s1068_s13, %s622_s28   ;;  %v594_v26 = vadd.f32 %v593_v24, %v592_v23  ;;  %v599_v27 = vadd.f32 %v598_v25, %v597_v6  ;;  %vm619_vm4 = vcmask 254976  }
 0x3f1   : > { %s727_s9 = sshll.u32 %s1003_s19, 1 }
 0x3f2   : > { %v600_v28 = vrot.slane %v599_v27, 2  ;;  %v595_v29 = vrot.slane %v594_v26, 1  ;;  %s281_s16 = scalar_lea.vmem %s1125_s7, %s727_s9 }
 0x3f4   : > { %v601_v30 = vadd.f32 %v600_v28, %v599_v27  ;;  %v596_v32 = vadd.f32 %v595_v29, %v594_v26 }
 0x3f6   : > { %v602_v31 = vrot.slane %v601_v30, 1 }
 0x3f8   : > { %v603_v33 = vadd.f32 %v602_v31, %v601_v30 }
 0x3fa   : > { %v617_v34 = vsel %vm517_vm2, %v603_v33, %v596_v32 }
 0x3fb   : > { %620 = vst.msk [vmem:[%s281_s16] sm:$0x3] %vm619_vm4, %v617_v34 }
 0x3fc PF: > { %p780_p5 = scmp.ge.s32.totalorder %s895_s27, 2  ;;  %s654_s11 = sand.u32 1, %s883_s24  }
 0x3fd   : > { %s655_s19 = scalar_lea.sflag [#allocation3], %s654_s11 }
 0x3fe   : > { %p777_p1 = pnand %p780_p5, %p984_p6 }
 0x400   : > { %878 = dma.done.wait (!%p777_p1), %s655_s19, 32  }
 0x401   : > { %880 = vsyncadd (!%p777_p1), %s655_s19, 4294967264  ;;  %p18_p2 = scmp.ge.s32.totalorder %s967_s30, 6   ;;  %s1128_s24 = smov %s887_s25 }
 0x402   : > { %s1129_s25 = smov %s891_s26  ;;  %s1130_s26 = smov %s978_s10 }
 0x403   : > { %s1131_s27 = smov %s967_s30  ;;  %20 = sbr.rel (!%p18_p2) target bundleno = 3 (0x3), region = 91 }
 0x40a   :  { %667 = vsyncpa [#allocation3], 1 }
 0x40b   :  { %669 = vsyncpa [#allocation3 + $0x1], 1 }

</bundles_post_ra>
